<compile_context>
chip_gen: v6e
topology: v6e:2x2x1
jax: 0.10.0
libtpu: 0.0.40
codegen_flags: <defaults>
</compile_context>

<pallas_src>
import functools

import jax
import jax.numpy as jnp
from jax.experimental import pallas as pl
from jax.experimental.pallas import tpu as pltpu

_LANE = 128


def _round_up(n, m):
    return ((n + m - 1) // m) * m


def _tanh_dtype_for_device():
    """bf16 tanh on chips with a bf16 EUP path (v6e/v7x); f32 elsewhere."""
    try:
        kind = jax.devices()[0].device_kind.lower()
    except Exception:
        return jnp.float32
    if "v6" in kind or "v7" in kind:
        return jnp.bfloat16
    return jnp.float32


def _dqn_compute(x_ref, w1_ref, b1_ref, w2_ref, b2_ref, w3_ref, b3_ref, act_dtype):
    # x arrives as f32 (bt, D); cast to bf16 in-kernel (hidden under the DMA pipeline).
    x = x_ref[...].astype(jnp.bfloat16)                              # (bt, D)

    # h1^T = W1^T @ x^T  -> contract dim 1 of both operands (NT matmul), f32 acc.
    z1 = jax.lax.dot_general(
        w1_ref[...], x, (((1,), (1,)), ((), ())),
        preferred_element_type=jnp.float32) + b1_ref[...]            # (64, bt) f32
    h1 = jnp.tanh(z1.astype(act_dtype)).astype(jnp.bfloat16)         # (64, bt) bf16

    z2 = jnp.dot(w2_ref[...], h1,
                 preferred_element_type=jnp.float32) + b2_ref[...]   # (32, bt) f32
    h2 = jnp.tanh(z2.astype(act_dtype)).astype(jnp.bfloat16)         # (32, bt) bf16

    q = jnp.dot(w3_ref[...], h2,
                preferred_element_type=jnp.float32) + b3_ref[...]    # (A, bt) f32

    # Fused greedy action: first (lowest-index) row attaining the per-column max.
    # Reduction is over the tiny sublane axis (A=4) -> a handful of VPU selects.
    a_dim = q.shape[0]
    row_idx = jax.lax.broadcasted_iota(jnp.int32, q.shape, 0)
    col_max = jnp.max(q, axis=0, keepdims=True)
    greedy = jnp.min(jnp.where(q == col_max, row_idx, a_dim),
                     axis=0, keepdims=True).astype(jnp.int32)        # (1, bt)
    return q, greedy


def _dqn_kernel_full(x_ref, w1_ref, b1_ref, w2_ref, b2_ref, w3_ref, b3_ref,
                     q_ref, a_ref, *, act_dtype):
    q, a = _dqn_compute(x_ref, w1_ref, b1_ref, w2_ref, b2_ref, w3_ref, b3_ref,
                        act_dtype)
    q_ref[...] = q
    a_ref[...] = a


def _dqn_kernel_act_only(x_ref, w1_ref, b1_ref, w2_ref, b2_ref, w3_ref, b3_ref,
                         a_ref, *, act_dtype):
    _, a = _dqn_compute(x_ref, w1_ref, b1_ref, w2_ref, b2_ref, w3_ref, b3_ref,
                        act_dtype)
    a_ref[...] = a


def _choose_tiles(B, b_tile):
    """Pick (bt, B_pad, steps): bt multiple of 128 (lane dim), minimal padding,
    and >=2 grid steps for large batches so v7x's second TC isn't idle."""
    steps = max(1, pl.cdiv(B, b_tile))
    if steps < 2 and B >= 2 * _LANE:
        steps = 2
    bt = _round_up(pl.cdiv(B, steps), _LANE)
    B_pad = _round_up(B, bt)
    steps = B_pad // bt
    return bt, B_pad, steps


def dqn_forward(x, prep, *, b_tile=16384, with_qvals=True, act_dtype=None):
    """x: (B, envstate_dim) float32, prep: output of prepare_params().

    Returns (qvals (B, A) f32, greedy (B,) i32) if with_qvals else greedy (B,) i32.
    """
    B, D = x.shape
    A = prep["w3t"].shape[0]
    if act_dtype is None:
        act_dtype = _tanh_dtype_for_device()

    bt, B_pad, steps = _choose_tiles(B, b_tile)
    if B_pad != B:
        # Only the ragged remainder (< bt rows) is padded; padded rows are sliced off.
        x = jnp.pad(x, ((0, B_pad - B), (0, 0)))

    resident = lambda arr: pl.BlockSpec(arr.shape, lambda i: (0, 0))
    in_specs = [
        pl.BlockSpec((bt, D), lambda i: (i, 0)),          # x: streamed row tiles (f32)
        resident(prep["w1t"]), resident(prep["b1c"]),
        resident(prep["w2t"]), resident(prep["b2c"]),
        resident(prep["w3t"]), resident(prep["b3c"]),
    ]
    compiler_params = pltpu.CompilerParams(
        dimension_semantics=("parallel",),                # shard batch grid across v7x's 2 TCs
        vmem_limit_bytes=48 * 1024 * 1024,                # < v7x 64 MiB physical
    )

    if with_qvals:
        out_shape = (jax.ShapeDtypeStruct((A, B_pad), jnp.float32),
                     jax.ShapeDtypeStruct((1, B_pad), jnp.int32))
        out_specs = (pl.BlockSpec((A, bt), lambda i: (0, i)),   # lane-dense (last dim = bt)
                     pl.BlockSpec((1, bt), lambda i: (0, i)))
        kernel = functools.partial(_dqn_kernel_full, act_dtype=act_dtype)
    else:
        out_shape = jax.ShapeDtypeStruct((1, B_pad), jnp.int32)
        out_specs = pl.BlockSpec((1, bt), lambda i: (0, i))
        kernel = functools.partial(_dqn_kernel_act_only, act_dtype=act_dtype)

    out = pl.pallas_call(
        kernel,
        out_shape=out_shape,
        grid=(steps,),
        in_specs=in_specs,
        out_specs=out_specs,
        compiler_params=compiler_params,
    )(x, prep["w1t"], prep["b1c"], prep["w2t"], prep["b2c"], prep["w3t"], prep["b3c"])

    if with_qvals:
        qT, aT = out
        return qT[:, :B].T, aT[0, :B]
    return out[0, :B]


def init_params(key, envstate_dim, action_dim):
    """Deterministic init mimicking PyTorch nn.Linear (uniform +/- 1/sqrt(fan_in)).

    Master weights stored (in_features, out_features) f32; biases (1, out_features) f32.
    """
    dims = [(envstate_dim, 64), (64, 32), (32, action_dim)]
    params = {}
    keys = jax.random.split(key, 2 * len(dims))
    for i, (fin, fout) in enumerate(dims):
        bound = 1.0 / jnp.sqrt(jnp.float32(fin))
        params[f"w{i+1}"] = jax.random.uniform(
            keys[2 * i], (fin, fout), jnp.float32, -bound, bound)
        params[f"b{i+1}"] = jax.random.uniform(
            keys[2 * i + 1], (1, fout), jnp.float32, -bound, bound)
    return params


def prepare_params(params):
    """One-time conversion for the kernel: transpose weights to (out, in) bf16,
    reshape biases to (out, 1) f32 columns.  Call once per parameter update."""
    return {
        "w1t": params["w1"].T.astype(jnp.bfloat16),
        "b1c": params["b1"].reshape(-1, 1).astype(jnp.float32),
        "w2t": params["w2"].T.astype(jnp.bfloat16),
        "b2c": params["b2"].reshape(-1, 1).astype(jnp.float32),
        "w3t": params["w3"].T.astype(jnp.bfloat16),
        "b3c": params["b3"].reshape(-1, 1).astype(jnp.float32),
    }


def reference_forward(x, params):
    h1 = jnp.tanh(x @ params["w1"] + params["b1"])
    h2 = jnp.tanh(h1 @ params["w2"] + params["b2"])
    return h2 @ params["w3"] + params["b3"]


if __name__ == "__main__":
    key = jax.random.PRNGKey(0)
    k_param, k_x = jax.random.split(key)

    batch = 8
    envstate_dim = 16
    action_dim = 4

    params = init_params(k_param, envstate_dim, action_dim)
    prep = prepare_params(params)
    x = jax.random.normal(k_x, (batch, envstate_dim), jnp.float32)

    qvals, greedy = dqn_forward(x, prep)
    qvals, greedy = jax.block_until_ready((qvals, greedy))

    # act()-only path (no q-value writeback).
    greedy_only = jax.block_until_ready(dqn_forward(x, prep, with_qvals=False))

    ref = reference_forward(x, params)
    assert qvals.shape == (batch, action_dim)
    assert greedy.shape == (batch,)
    # bf16 matmul operands -> loosened tolerance vs. the f32 reference.
    assert jnp.allclose(qvals, ref, atol=5e-2, rtol=5e-2), "mismatch vs JAX reference"
    # fused argmax must agree with argmax of the kernel's own Q-values.
    assert bool(jnp.all(greedy == jnp.argmax(qvals, axis=-1))), "greedy-action mismatch"
    assert bool(jnp.all(greedy_only == greedy)), "act-only path mismatch"

    print("KERNEL_OK")
</pallas_src>

<mosaic_0001>
module attributes {stable_mosaic.version = 11 : i64} {
  func.func @_dqn_kernel_full(%arg0: i32, %arg1: memref<128x16xf32, #tpu.memory_space<vmem>>, %arg2: memref<64x16xbf16, #tpu.memory_space<vmem>>, %arg3: memref<64x1xf32, #tpu.memory_space<vmem>>, %arg4: memref<32x64xbf16, #tpu.memory_space<vmem>>, %arg5: memref<32x1xf32, #tpu.memory_space<vmem>>, %arg6: memref<4x32xbf16, #tpu.memory_space<vmem>>, %arg7: memref<4x1xf32, #tpu.memory_space<vmem>>, %arg8: memref<4x128xf32, #tpu.memory_space<vmem>>, %arg9: memref<1x128xi32, #tpu.memory_space<vmem>>) attributes {dimension_semantics = [#tpu.dimension_semantics<parallel>], iteration_bounds = array<i64: 1>, scalar_prefetch = 0 : i64, scratch_operands = 0 : i64, tpu.core_type = #tpu.core_type<tc>, window_params = [{transform_indices = @transform_0, window_bounds = array<i64: 128, 16>}, {pipeline_mode = #tpu.pipeline_mode<synchronous>, transform_indices = @transform_1, window_bounds = array<i64: 64, 16>}, {pipeline_mode = #tpu.pipeline_mode<synchronous>, transform_indices = @transform_2, window_bounds = array<i64: 64, 1>}, {pipeline_mode = #tpu.pipeline_mode<synchronous>, transform_indices = @transform_3, window_bounds = array<i64: 32, 64>}, {pipeline_mode = #tpu.pipeline_mode<synchronous>, transform_indices = @transform_4, window_bounds = array<i64: 32, 1>}, {pipeline_mode = #tpu.pipeline_mode<synchronous>, transform_indices = @transform_5, window_bounds = array<i64: 4, 32>}, {pipeline_mode = #tpu.pipeline_mode<synchronous>, transform_indices = @transform_6, window_bounds = array<i64: 4, 1>}, {transform_indices = @transform_7, window_bounds = array<i64: 4, 128>}, {transform_indices = @transform_8, window_bounds = array<i64: 1, 128>}]} {
    %c0 = arith.constant 0 : index
    %c0_0 = arith.constant 0 : index
    %0 = vector.load %arg1[%c0, %c0_0] : memref<128x16xf32, #tpu.memory_space<vmem>>, vector<128x16xf32>
    %1 = arith.truncf %0 : vector<128x16xf32> to vector<128x16xbf16>
    %c0_1 = arith.constant 0 : index
    %c0_2 = arith.constant 0 : index
    %2 = vector.load %arg2[%c0_1, %c0_2] : memref<64x16xbf16, #tpu.memory_space<vmem>>, vector<64x16xbf16>
    %cst = arith.constant dense<0.000000e+00> : vector<64x128xf32>
    %3 = tpu.matmul %2, %1, %cst {dimension_numbers = #tpu.dot_dimension_numbers<[1], [1], [0], [0], [0, 0, 1, 0], [], []>} : vector<64x16xbf16>, vector<128x16xbf16>, vector<64x128xf32> -> vector<64x128xf32>
    %c0_3 = arith.constant 0 : index
    %c0_4 = arith.constant 0 : index
    %4 = vector.load %arg3[%c0_3, %c0_4] : memref<64x1xf32, #tpu.memory_space<vmem>>, vector<64x1xf32>
    %5 = vector.broadcast %4 : vector<64x1xf32> to vector<64x128xf32>
    %6 = arith.addf %3, %5 : vector<64x128xf32>
    %7 = math.tanh %6 : vector<64x128xf32>
    %8 = arith.truncf %7 : vector<64x128xf32> to vector<64x128xbf16>
    %c0_5 = arith.constant 0 : index
    %c0_6 = arith.constant 0 : index
    %9 = vector.load %arg4[%c0_5, %c0_6] : memref<32x64xbf16, #tpu.memory_space<vmem>>, vector<32x64xbf16>
    %cst_7 = arith.constant dense<0.000000e+00> : vector<32x128xf32>
    %10 = tpu.matmul %9, %8, %cst_7 {dimension_numbers = #tpu.dot_dimension_numbers<[1], [0], [0], [1], [0, 0, 1, 1], [], []>} : vector<32x64xbf16>, vector<64x128xbf16>, vector<32x128xf32> -> vector<32x128xf32>
    %c0_8 = arith.constant 0 : index
    %c0_9 = arith.constant 0 : index
    %11 = vector.load %arg5[%c0_8, %c0_9] : memref<32x1xf32, #tpu.memory_space<vmem>>, vector<32x1xf32>
    %12 = vector.broadcast %11 : vector<32x1xf32> to vector<32x128xf32>
    %13 = arith.addf %10, %12 : vector<32x128xf32>
    %14 = math.tanh %13 : vector<32x128xf32>
    %15 = arith.truncf %14 : vector<32x128xf32> to vector<32x128xbf16>
    %c0_10 = arith.constant 0 : index
    %c0_11 = arith.constant 0 : index
    %16 = vector.load %arg6[%c0_10, %c0_11] : memref<4x32xbf16, #tpu.memory_space<vmem>>, vector<4x32xbf16>
    %cst_12 = arith.constant dense<0.000000e+00> : vector<4x128xf32>
    %17 = tpu.matmul %16, %15, %cst_12 {dimension_numbers = #tpu.dot_dimension_numbers<[1], [0], [0], [1], [0, 0, 1, 1], [], []>} : vector<4x32xbf16>, vector<32x128xbf16>, vector<4x128xf32> -> vector<4x128xf32>
    %c0_13 = arith.constant 0 : index
    %c0_14 = arith.constant 0 : index
    %18 = vector.load %arg7[%c0_13, %c0_14] : memref<4x1xf32, #tpu.memory_space<vmem>>, vector<4x1xf32>
    %19 = vector.broadcast %18 : vector<4x1xf32> to vector<4x128xf32>
    %20 = arith.addf %17, %19 : vector<4x128xf32>
    %21 = tpu.iota {dimensions = array<i32: 0>} : vector<4x128xi32>
    %cst_15 = arith.constant dense<0xFF800000> : vector<128xf32>
    %22 = vector.multi_reduction <maximumf>, %20, %cst_15 [0] : vector<4x128xf32> to vector<128xf32>
    %23 = vector.shape_cast %22 : vector<128xf32> to vector<1x128xf32>
    %24 = vector.broadcast %23 : vector<1x128xf32> to vector<4x128xf32>
    %25 = arith.cmpf oeq, %20, %24 : vector<4x128xf32>
    %c4_i32 = arith.constant 4 : i32
    %26 = vector.broadcast %c4_i32 : i32 to vector<4x128xi32>
    %27 = arith.select %25, %21, %26 : vector<4x128xi1>, vector<4x128xi32>
    %cst_16 = arith.constant dense<2147483647> : vector<128xi32>
    %28 = vector.multi_reduction <minsi>, %27, %cst_16 [0] : vector<4x128xi32> to vector<128xi32>
    %29 = vector.shape_cast %28 : vector<128xi32> to vector<1x128xi32>
    %c0_17 = arith.constant 0 : index
    %c0_18 = arith.constant 0 : index
    %30 = vector.load %arg8[%c0_17, %c0_18] : memref<4x128xf32, #tpu.memory_space<vmem>>, vector<4x128xf32>
    tpu.vector_store %arg8[%c0_17, %c0_18], %20 {strides = array<i32>} : memref<4x128xf32, #tpu.memory_space<vmem>>, vector<4x128xf32>,
    %c0_19 = arith.constant 0 : index
    %c0_20 = arith.constant 0 : index
    %31 = vector.load %arg9[%c0_19, %c0_20] : memref<1x128xi32, #tpu.memory_space<vmem>>, vector<1x128xi32>
    tpu.vector_store %arg9[%c0_19, %c0_20], %29 {strides = array<i32>} : memref<1x128xi32, #tpu.memory_space<vmem>>, vector<1x128xi32>,
    return
  }
  func.func @transform_0(%arg0: i32) -> (i32, i32) {
    %c0_i32 = arith.constant 0 : i32
    %c0_i32_0 = arith.constant 0 : i32
    return %arg0, %c0_i32 : i32, i32
  }
  func.func @transform_1(%arg0: i32) -> (i32, i32) {
    %c0_i32 = arith.constant 0 : i32
    %c0_i32_0 = arith.constant 0 : i32
    %c0_i32_1 = arith.constant 0 : i32
    return %c0_i32, %c0_i32_0 : i32, i32
  }
  func.func @transform_2(%arg0: i32) -> (i32, i32) {
    %c0_i32 = arith.constant 0 : i32
    %c0_i32_0 = arith.constant 0 : i32
    %c0_i32_1 = arith.constant 0 : i32
    return %c0_i32, %c0_i32_0 : i32, i32
  }
  func.func @transform_3(%arg0: i32) -> (i32, i32) {
    %c0_i32 = arith.constant 0 : i32
    %c0_i32_0 = arith.constant 0 : i32
    %c0_i32_1 = arith.constant 0 : i32
    return %c0_i32, %c0_i32_0 : i32, i32
  }
  func.func @transform_4(%arg0: i32) -> (i32, i32) {
    %c0_i32 = arith.constant 0 : i32
    %c0_i32_0 = arith.constant 0 : i32
    %c0_i32_1 = arith.constant 0 : i32
    return %c0_i32, %c0_i32_0 : i32, i32
  }
  func.func @transform_5(%arg0: i32) -> (i32, i32) {
    %c0_i32 = arith.constant 0 : i32
    %c0_i32_0 = arith.constant 0 : i32
    %c0_i32_1 = arith.constant 0 : i32
    return %c0_i32, %c0_i32_0 : i32, i32
  }
  func.func @transform_6(%arg0: i32) -> (i32, i32) {
    %c0_i32 = arith.constant 0 : i32
    %c0_i32_0 = arith.constant 0 : i32
    %c0_i32_1 = arith.constant 0 : i32
    return %c0_i32, %c0_i32_0 : i32, i32
  }
  func.func @transform_7(%arg0: i32) -> (i32, i32) {
    %c0_i32 = arith.constant 0 : i32
    %c0_i32_0 = arith.constant 0 : i32
    return %c0_i32, %arg0 : i32, i32
  }
  func.func @transform_8(%arg0: i32) -> (i32, i32) {
    %c0_i32 = arith.constant 0 : i32
    %c0_i32_0 = arith.constant 0 : i32
    return %c0_i32, %arg0 : i32, i32
  }
}

</mosaic_0001>

<bundles_post_ra>
// kernel: tpu_custom_call.1
= control target key start
LH: loop header
LB: loop body
LE: loop exit
PB: predicated region body
PF: predicated region fallthrough
CT: control target
= control target key end

     0   :  { %14 = vsyncpa [#allocation3], 0  ;;  %vm131_vm0 = vcmask 130048   ;;  %v615_v5 = vmov 0   ;;  %s803_s0 = inlined_call_operand.vmem [shape: f32[128,16], index: 0, kind: input, shape index: {}]   ;;  %s804_s1 = inlined_call_operand.vmem [shape: bf16[64,16], index: 1, kind: input, shape index: {}]   ;;  %s805_s2 = inlined_call_operand.vmem [shape: f32[64,1], index: 2, kind: input, shape index: {}]   ;;  %s806_s3 = inlined_call_operand.vmem [shape: bf16[32,64], index: 3, kind: input, shape index: {}]   ;;  %s807_s4 = inlined_call_operand.vmem [shape: f32[32,1], index: 4, kind: input, shape index: {}]   ;;  %s808_s5 = inlined_call_operand.vmem [shape: bf16[4,32], index: 5, kind: input, shape index: {}]   ;;  %s809_s6 = inlined_call_operand.vmem [shape: f32[4,1], index: 6, kind: input, shape index: {}]   ;;  %s810_s7 = inlined_call_operand.hbm [shape: f32[4,128], index: 7, kind: output, shape index: {0}]   ;;  %s811_s8 = inlined_call_operand.hbm [shape: s32[1,128], index: 8, kind: output, shape index: {1}]  }
   0x1   :  { %v45_v0 = vld [vmem:[%s803_s0 + $0x70] sm:$0xff]  ;;  %v46_v1 = vld [vmem:[%s803_s0 + $0x78] sm:$0xff]  ;;  %v43_v2 = vld [vmem:[%s803_s0 + $0x60] sm:$0xff]  ;;  %539 = vset.pattern.permute.xlu0 %v615_v5  ;;  %540 = vset.pattern.permute.xlu1 %v615_v5 }
   0x2   :  { %v54_v3 = vpack.c.bf16 %v46_v1, %v45_v0  ;;  %v44_v4 = vld [vmem:[%s803_s0 + $0x68] sm:$0xff]  ;;  %v41_v8 = vld [vmem:[%s803_s0 + $0x50] sm:$0xff]  ;;  %v42_v9 = vld [vmem:[%s803_s0 + $0x58] sm:$0xff] }
   0x3   :  { %v53_v6 = vpack.c.bf16 %v44_v4, %v43_v2  ;;  %v541_v10 = vld [vmem:[%s804_s1] sm:$0xff]   ;;  %v52_v12 = vpack.c.bf16 %v42_v9, %v41_v8  ;;  %v69_v13 = vld [vmem:[%s805_s2 + $0x30] sm:$0xff]  ;;  %v70_v15 = vld [vmem:[%s805_s2 + $0x38] sm:$0xff] }
   0x4   :  { %526 = vmatprep.subr.msk.bf16.mxu0 %vm131_vm0, %v54_v3  ;;  %v166_v7 = vsel %vm131_vm0, %v54_v3, 0  ;;  %498 = vmatprep.mubr.msk.bf16.mxu0 %vm131_vm0, %v541_v10  ;;  %v67_v14 = vld [vmem:[%s805_s2 + $0x20] sm:$0xff]  ;;  %v68_v16 = vld [vmem:[%s805_s2 + $0x28] sm:$0xff]  ;;  %v65_v19 = vld [vmem:[%s805_s2 + $0x10] sm:$0xff] }
   0x5   :  { %483 = vmatpush3.bf16.xpose.msra.mxu0 %v166_v7  ;;  %v163_v11 = vsel %vm131_vm0, %v53_v6, 0  ;;  %103 = vperm.xlu0 %539, %v69_v13   ;;  %v39_v17 = vld [vmem:[%s803_s0 + $0x40] sm:$0xff]  ;;  %v40_v18 = vld [vmem:[%s803_s0 + $0x48] sm:$0xff] }
   0x6   :  { %527 = vmatprep.subr.msk.bf16.mxu0 %vm131_vm0, %v53_v6  ;;  %93 = vperm.xlu1 %540, %v67_v14  }
   0x9   :  { %108 = vperm.xlu0 %539, %v70_v15  }
   0xa   :  { %98 = vperm.xlu1 %540, %v68_v16  }
   0xd   :  { %485 = vmatpush3.bf16.xpose.msra.mxu0 %v163_v11 }
   0xe   :  { %528 = vmatprep.subr.msk.bf16.mxu0 %vm131_vm0, %v52_v12 }
   0xf   :  { %15 = vsyncpa [#allocation5], 0  ;;  %v66_v20 = vld [vmem:[%s805_s2 + $0x18] sm:$0xff]  ;;  %v160_v21 = vsel %vm131_vm0, %v52_v12, 0  ;;  %v51_v22 = vpack.c.bf16 %v40_v18, %v39_v17  ;;  %83 = vperm.xlu0 %539, %v65_v19   ;;  %v63_v23 = vld [vmem:[%s805_s2] sm:$0xff]  ;;  %vm283_vm1 = vcmask 523264  }
  0x10   :  { %88 = vperm.xlu1 %540, %v66_v20   ;;  %v64_v24 = vld [vmem:[%s805_s2 + $0x8] sm:$0xff]  ;;  %v37_v25 = vld [vmem:[%s803_s0 + $0x30] sm:$0xff]  ;;  %v38_v26 = vld [vmem:[%s803_s0 + $0x38] sm:$0xff]  ;;  %vm617_vm2 = vmmov 0   ;;  %vm352_vm3 = vcmask 261120   ;;  %s618_s26 = smov [#allocation2]  }
  0x11   :  { %v251_v27 = vld [vmem:[%s807_s4 + $0x10] sm:$0xff]  ;;  %v252_v28 = vld [vmem:[%s807_s4 + $0x18] sm:$0xff]  ;;  %v157_v29 = vsel %vm131_vm0, %v51_v22, 0  ;;  %v50_v30 = vpack.c.bf16 %v38_v26, %v37_v25  ;;  %v249_v31 = vld [vmem:[%s807_s4] sm:$0xff]  ;;  %s426_s27 = sshll.u32 %s618_s26, 4  ;;  %vm398_vm4 = vcmask 1043456   ;;  %s427_s27 = int_to_ptr.vmem [resolvable:$true] %s426_s27 }
  0x12   :  { %v250_v32 = vld [vmem:[%s807_s4 + $0x8] sm:$0xff]  ;;  %v35_v33 = vld [vmem:[%s803_s0 + $0x20] sm:$0xff]  ;;  %v33_v38 = vld [vmem:[%s803_s0 + $0x10] sm:$0xff]  ;;  %s571_s28 = scalar_lea.vmem %s427_s27, 64  ;;  %p576_p1 = scmp.lt.s32.totalorder %s427_s27, %s427_s27 }
  0x13   :  { %73 = vperm.xlu0 %539, %v63_v23   ;;  %v36_v34 = vld [vmem:[%s803_s0 + $0x28] sm:$0xff]  ;;  %v346_v35 = vld [vmem:[%s809_s6] sm:$0xf]  ;;  %v154_v36 = vsel %vm131_vm0, %v50_v30, 0  ;;  %v34_v39 = vld [vmem:[%s803_s0 + $0x18] sm:$0xff]  ;;  %p572_p0 = scmp.ne.s32.totalorder %s427_s27, %s571_s28  ;;  %p577_p2 = scmp.lt.s32.totalorder %s571_s28, %s571_s28 }
  0x14   :  { %78 = vperm.xlu1 %540, %v64_v24   ;;  %v49_v37 = vpack.c.bf16 %v36_v34, %v35_v33  ;;  %v48_v41 = vpack.c.bf16 %v34_v39, %v33_v38  ;;  %v31_v42 = vld [vmem:[%s803_s0] sm:$0xff]  ;;  %v32_v43 = vld [vmem:[%s803_s0 + $0x8] sm:$0xff]  ;;  %v543_v48 = vld [vmem:[%s804_s1 + $0x10] sm:$0xff]   ;;  %v616_v24 = vmov 0.0  }
  0x15   :  { %487 = vmatpush3.bf16.xpose.msra.mxu0 %v160_v21  ;;  %v47_v45 = vpack.c.bf16 %v32_v43, %v31_v42  ;;  %v542_v47 = vld [vmem:[%s804_s1 + $0x8] sm:$0xff]   ;;  %v544_v49 = vld [vmem:[%s804_s1 + $0x18] sm:$0xff]   ;;  %v545_v50 = vld [vmem:[%s806_s3] sm:$0xff]   ;;  %p578_p3 = por %p577_p2, %p576_p1 }
  0x16   :  { %529 = vmatprep.subr.msk.bf16.mxu0 %vm131_vm0, %v51_v22  ;;  %v151_v40 = vsel %vm131_vm0, %v49_v37, 0  ;;  %v148_v44 = vsel %vm131_vm0, %v48_v41, 0  ;;  %514 = vmatprep.mubr.msk.bf16.mxu1 %vm283_vm1, %v545_v50  ;;  %v546_v23 = vld [vmem:[%s806_s3 + $0x8] sm:$0xff]   ;;  %v345_v43 = vld [vmem:[%s808_s5] sm:$0x3] }
  0x17   :  { %265 = vperm.xlu0 %539, %v251_v27   ;;  %v145_v46 = vsel %vm131_vm0, %v47_v45, 0  ;;  %p579_p4 = pnand %p578_p3, %p572_p0 }
  0x18   :  { %270 = vperm.xlu1 %540, %v252_v28  }
  0x1b   :  { %255 = vperm.xlu0 %539, %v249_v31  }
  0x1c   :  { %260 = vperm.xlu1 %540, %v250_v32  }
  0x1d   :  { %489 = vmatpush3.bf16.xpose.msra.mxu0 %v157_v29 }
  0x1e   :  { %530 = vmatprep.subr.msk.bf16.mxu0 %vm131_vm0, %v50_v30 }
  0x1f   :  { %349 = vperm.xlu0 %539, %v346_v35  }
  0x25   :  { %491 = vmatpush3.bf16.xpose.msra.mxu0 %v154_v36 }
  0x26   :  { %531 = vmatprep.subr.msk.bf16.mxu0 %vm131_vm0, %v49_v37 }
  0x2d   :  { %493 = vmatpush3.bf16.xpose.msra.mxu0 %v151_v40 }
  0x2e   :  { %532 = vmatprep.subr.msk.bf16.mxu0 %vm131_vm0, %v48_v41 }
  0x35   :  { %495 = vmatpush3.bf16.xpose.msra.mxu0 %v148_v44 }
  0x36   :  { %533 = vmatprep.subr.msk.bf16.mxu0 %vm131_vm0, %v47_v45 }
  0x3d   :  { %497 = vmatpush3.bf16.xpose.msra.mxu0 %v145_v46 }
  0x44   :  { %499 = vmatmul.mubr.msk.bf16.vlgmr.msra.gmra.mxu0 %vm131_vm0, %v542_v47 }
  0x45   :  { %502 = vmatprep.mubr.msk.bf16.mxu0 %vm131_vm0, %v543_v48 }
  0x4c   :  { %503 = vmatmul.mubr.msk.bf16.gmra.mxu0 %vm131_vm0, %v544_v49 }
  0x80   :  { %v104_v53 = vpop.permute.xlu0 %103 }
  0x81   :  { %v94_v51 = vpop.permute.xlu1 %93 }
  0x84   :  { %v109_v58 = vpop.permute.xlu0 %108 }
  0x85   :  { %v99_v56 = vpop.permute.xlu1 %98 }
  0x8a   :  { %v84_v2 = vpop.permute.xlu0 %83 }
  0x8b   :  { %v89_v62 = vpop.permute.xlu1 %88 }
  0x8e   :  { %v74_v9 = vpop.permute.xlu0 %73 }
  0x8f   :  { %v79_v7 = vpop.permute.xlu1 %78 }
  0x92   :  { %v266_v25 = vpop.permute.xlu0 %265 }
  0x93   :  { %v271_v26 = vpop.permute.xlu1 %270 }
  0x96   :  { %v256_v31 = vpop.permute.xlu0 %255 }
  0x97   :  { %v261_v33 = vpop.permute.xlu1 %260 }
  0x9a   :  { %v350_v44 = vpop.permute.xlu0 %349 }
 0x104   :  { %v500_v52 = vpop.f32.mrf.mxu0 }
 0x105   :  { %v211_v6 = vadd.f32 %v500_v52, %v84_v2 }
 0x106   :  { %v202_v54 = vpop.f32.mrf.mxu0 }
 0x107   :  { %v203_v10 = vadd.f32 %v202_v54, %v74_v9 }
 0x108   :  { %v501_v55 = vpop.f32.mrf.mxu0 }
 0x109   :  { %v214_v4 = vadd.f32 %v501_v55, %v89_v62 }
 0x10a   :  { %v205_v57 = vpop.f32.mrf.mxu0 }
 0x10b   :  { %v206_v8 = vadd.f32 %v205_v57, %v79_v7 }
 0x10c   :  { %v504_v59 = vpop.f32.mrf.mxu0 }
 0x10d   :  { %v227_v60 = vadd.f32 %v504_v59, %v104_v53 }
 0x10e   :  { %v218_v61 = vpop.f32.mrf.mxu0 }
 0x10f   :  { %v219_v63 = vadd.f32 %v218_v61, %v94_v51  ;;  %547 = vtanh.f32 %v227_v60 }
 0x110   :  { %v505_v0 = vpop.f32.mrf.mxu0 }
 0x111   :  { %v230_v1 = vadd.f32 %v505_v0, %v109_v58 }
 0x112   :  { %v221_v3 = vpop.f32.mrf.mxu0 }
 0x113   :  { %549 = vtanh.f32 %v230_v1  ;;  %v222_v5 = vadd.f32 %v221_v3, %v99_v56 }
 0x114   :  { %551 = vtanh.f32 %v219_v63 }
 0x115   :  { %553 = vtanh.f32 %v222_v5 }
 0x116   :  { %555 = vtanh.f32 %v214_v4 }
 0x117   :  { %557 = vtanh.f32 %v211_v6 }
 0x118   :  { %559 = vtanh.f32 %v206_v8 }
 0x119   :  { %561 = vtanh.f32 %v203_v10 }
 0x11c   :  { %v548_v11 = vpop.eup %547 }
 0x120   :  { %v550_v12 = vpop.eup %549 }
 0x121   :  { %v552_v13 = vpop.eup %551  ;;  %v244_v14 = vpack.c.bf16 %v550_v12, %v548_v11 }
 0x122   :  { %v554_v15 = vpop.eup %553 }
 0x123   :  { %506 = vmatprep.subr.bf16.mxu1 %v244_v14  ;;  %v243_v16 = vpack.c.bf16 %v554_v15, %v552_v13  ;;  %v556_v17 = vpop.eup %555 }
 0x124   :  { %507 = vmatpush3.bf16.msra.mxu1 %v244_v14  ;;  %v558_v18 = vpop.eup %557 }
 0x125   :  { %508 = vmatprep.subr.bf16.mxu1 %v243_v16  ;;  %v242_v19 = vpack.c.bf16 %v556_v17, %v558_v18  ;;  %v560_v20 = vpop.eup %559 }
 0x126   :  { %v562_v21 = vpop.eup %561 }
 0x127   :  { %v241_v22 = vpack.c.bf16 %v560_v20, %v562_v21 }
 0x128   :  { %509 = vmatpush3.bf16.msra.mxu1 %v243_v16 }
 0x129   :  { %510 = vmatprep.subr.bf16.mxu1 %v242_v19 }
 0x12c   :  { %511 = vmatpush3.bf16.msra.mxu1 %v242_v19 }
 0x12d   :  { %512 = vmatprep.subr.bf16.mxu1 %v241_v22 }
 0x130   :  { %513 = vmatpush3.bf16.msra.mxu1 %v241_v22 }
 0x131   :  { %518 = vmatprep.subr.bf16.mxu1 %v616_v24 }
 0x133   :  { %515 = vmatmul.mubr.msk.bf16.vlgmr.msra.gmra.mxu1 %vm283_vm1, %v546_v23 }
 0x134   :  { %522 = vmatprep.mubr.msk.bf16.mxu1 %vm617_vm2, %v616_v24 }
 0x1f3   :  { %v516_v27 = vpop.f32.mrf.mxu1 }
 0x1f4   :  { %v333_v28 = vadd.f32 %v516_v27, %v266_v25 }
 0x1f5   :  { %v324_v29 = vpop.f32.mrf.mxu1 }
 0x1f6   :  { %563 = vtanh.f32 %v333_v28  ;;  %v325_v35 = vadd.f32 %v324_v29, %v256_v31 }
 0x1f7   :  { %v517_v30 = vpop.f32.mrf.mxu1 }
 0x1f8   :  { %v336_v32 = vadd.f32 %v517_v30, %v271_v26 }
 0x1f9   :  { %v327_v34 = vpop.f32.mrf.mxu1 }
 0x1fa   :  { %565 = vtanh.f32 %v336_v32  ;;  %v328_v36 = vadd.f32 %v327_v34, %v261_v33 }
 0x1fc   :  { %567 = vtanh.f32 %v328_v36 }
 0x1fd   :  { %569 = vtanh.f32 %v325_v35 }
 0x203   :  { %v564_v37 = vpop.eup %563 }
 0x207   :  { %v566_v38 = vpop.eup %565 }
 0x208   :  { %v344_v39 = vpack.c.bf16 %v566_v38, %v564_v37 }
 0x209   :  { %v568_v40 = vpop.eup %567 }
 0x20a   :  { %519 = vmatpush3.bf16.msra.mxu1 %v344_v39  ;;  %v570_v41 = vpop.eup %569 }
 0x20b   :  { %520 = vmatprep.subr.bf16.mxu1 %v616_v24  ;;  %v343_v42 = vpack.c.bf16 %v568_v40, %v570_v41 }
 0x20e   :  { %521 = vmatpush3.bf16.msra.mxu1 %v343_v42 }
 0x211   :  { %523 = vmatmul.mubr.msk.bf16.vlgmr.msra.gmra.mxu1 %vm352_vm3, %v345_v43 }
 0x2d1   :  { %v390_v45 = vpop.f32.mrf.mxu1 }
 0x2d2   :  { %v391_v46 = vadd.f32 %v390_v45, %v350_v44 }
 0x2d3   :  { %v524_v47 = vpop.f32.mrf.mxu1 }
 0x2d4   :  { %v399_v48 = vsel %vm398_vm4, %v391_v46, -inf  ;;  %418 = vst [vmem:[#allocation2] sm:$0xf] %v391_v46 }
 0x2d5   :  { %v400_v49 = vrot.slane %v399_v48, 4  ;;  %v393_v50 = vpop.f32.mrf.mxu1 }
 0x2d6   :  { %582 = shalt.err (!%p579_p4)
}
 0x2d7   :  { %429 = dma.vmem_to_hbm [thread:$0]  %s427_s27, 64, %s810_s7, [#allocation3]   ;;  %v401_v51 = vmax.f32 %v399_v48, %v400_v49  ;;  %v525_v52 = vpop.f32.mrf.mxu1  ;;  %v396_v54 = vlaneseq }
 0x2d8   :  { %s619_s30 = smov [#allocation4]  }
 0x2d9   :  { %v402_v53 = vrot.slane %v401_v51, 2  ;;  %v397_v57 = vshrl.u32 %v396_v54, 7  ;;  %s436_s7 = sshll.u32 %s619_s30, 4  ;;  %s437_s7 = int_to_ptr.vmem [resolvable:$true] %s436_s7 }
 0x2da   :  { %s591_s9 = scalar_lea.vmem %s437_s7, 16  ;;  %s595_s10 = scalar_lea.vmem %s437_s7, 32 }
 0x2db   :  { %v403_v55 = vmax.f32 %v401_v51, %v402_v53  ;;  %p592_p5 = scmp.ne.s32.totalorder %s437_s7, %s591_s9  ;;  %p596_p6 = scmp.lt.s32.totalorder %s437_s7, %s437_s7 }
 0x2dc   :  { %p597_p7 = scmp.lt.s32.totalorder %s595_s10, %s591_s9 }
 0x2dd   :  { %v404_v56 = vrot.slane %v403_v55, 1 }
 0x2de   :  { %p598_p8 = por %p597_p7, %p596_p6 }
 0x2df   :  { %v405_v58 = vmax.f32 %v403_v55, %v404_v56 }
 0x2e0   :  { %p599_p9 = pnand %p598_p8, %p592_p5 }
 0x2e1   :  { %vm406_vm5 = vcmp.eq.f32.partialorder %v391_v46, %v405_v58 }
 0x2e2   :  { %v407_v59 = vsel %vm406_vm5, %v397_v57, 4 }
 0x2e3   :  { %v408_v60 = vsel %vm398_vm4, %v407_v59, 2147483647 }
 0x2e4   :  { %v409_v61 = vrot.slane %v408_v60, 4 }
 0x2e6   :  { %vm410_vm6 = vcmp.lt.s32.totalorder %v408_v60, %v409_v61 }
 0x2e7   :  { %v411_v62 = vsel %vm410_vm6, %v408_v60, %v409_v61 }
 0x2e8   :  { %v412_v63 = vrot.slane %v411_v62, 2 }
 0x2ea   :  { %vm413_vm7 = vcmp.lt.s32.totalorder %v411_v62, %v412_v63 }
 0x2eb   :  { %v414_v0 = vsel %vm413_vm7, %v411_v62, %v412_v63 }
 0x2ec   :  { %v415_v1 = vrot.slane %v414_v0, 1 }
 0x2ee   :  { %vm416_vm8 = vcmp.lt.s32.totalorder %v414_v0, %v415_v1 }
 0x2ef   :  { %v417_v2 = vsel %vm416_vm8, %v414_v0, %v415_v1 }
 0x2f0   :  { %419 = vst [vmem:[#allocation4] sm:$0x1] %v417_v2 }
 0x2f1   :  { %602 = shalt.err (!%p599_p9)
}
 0x2f2   :  { %439 = dma.vmem_to_hbm [thread:$0]  %s437_s7, 16, %s811_s8, [#allocation5]  }
 0x2f3   :  { %611 = dma.done.wait [#allocation3], 64  }
 0x2f4   :  { %612 = vsyncadd [#allocation3], 4294967232 }
 0x2f5   :  { %613 = dma.done.wait [#allocation5], 16  }
 0x2f6   :  { %614 = vsyncadd [#allocation5], 4294967280 }
 0x2f7   :  { %446 = vsyncpa [#allocation3], 1 }
 0x2f8   :  { %447 = vsyncpa [#allocation5], 1 }

</bundles_post_ra>
